<compile_context>
chip_gen: v6e
topology: v6e:2x2x1
jax: 0.10.0
libtpu: 0.0.40
codegen_flags: <defaults>
</compile_context>

<pallas_src>
import functools

import jax
import jax.numpy as jnp
from jax.experimental import pallas as pl
from jax.experimental.pallas import tpu as pltpu


def _pair(v):
    return (v, v) if isinstance(v, int) else tuple(v)


def _avgpool_kernel(x_ref, b_ref, o_ref, t_ref, *,
                    kh, sh, pad_top, pad_bottom, inv_area):
    """One grid step processes TP planes in native (P, H, W) layout.

    x_ref : (TP, H,  W )   input block  (W on lanes)
    b_ref : (W,  OW)       static 0/1 width-pooling matrix (encodes pad_l/pad_r)
    o_ref : (TP, OH, OW)   output block
    t_ref : (TP, Hp, OW)   f32 scratch: height-padded, width-reduced partials
    """
    tp, h, w = x_ref.shape
    _, hp, ow = t_ref.shape
    out_h = o_ref.shape[1]

    # ---- Stage 1: width reduction + left/right SAME padding on the MXU. ----
    # Out-of-image taps have no 1s in b_ref, so padded columns are never
    # materialized; padded zeros contribute 0 to the window sum.
    xw = jnp.dot(x_ref[...].reshape(tp * h, w), b_ref[...],
                 preferred_element_type=jnp.float32)

    # Zero only the few height-padding rows (static slices, tiny stores).
    # Done every step: negligible cost, stays correct under core sharding.
    if pad_top:
        t_ref[:, 0:pad_top, :] = jnp.zeros((tp, pad_top, ow), jnp.float32)
    if pad_bottom:
        t_ref[:, pad_top + h:hp, :] = jnp.zeros((tp, pad_bottom, ow),
                                                jnp.float32)
    # The only full-size VMEM store: the stage-1 result lands directly in the
    # interior of the height-padded scratch.
    t_ref[:, pad_top:pad_top + h, :] = xw.reshape(tp, h, ow)

    # ---- Stage 2: height reduction via sublane-strided loads (VPU adds). ----
    acc = t_ref[:, pl.ds(0, out_h, stride=sh), :]
    for i in range(1, kh):
        acc = acc + t_ref[:, pl.ds(i, out_h, stride=sh), :]

    # count_include_pad=True: always divide by kh*kw.
    o_ref[...] = (acc * inv_area).astype(o_ref.dtype)


def avg_pool2d_same_padding(x, kernel_size, stride):
    """x: (B, C, H, W). Matches the PyTorch AvgPool2dSamePadding module."""
    kh, kw = _pair(kernel_size)
    sh, sw = _pair(stride)
    b, c, h, w = x.shape
    p = b * c

    out_h = (h + sh - 1) // sh
    out_w = (w + sw - 1) // sw
    pad_h = max((out_h - 1) * sh + kh - h, 0)
    pad_w = max((out_w - 1) * sw + kw - w, 0)
    pad_top = pad_h // 2
    pad_bottom = pad_h - pad_top
    pad_left = pad_w // 2
    hp = h + pad_h

    # Static width-pooling matrix: pool_mat[w, ow] = 1 iff column w falls in
    # output window ow (after SAME left-padding).
    w_idx = jnp.arange(w, dtype=jnp.int32)[:, None]
    starts = jnp.arange(out_w, dtype=jnp.int32)[None, :] * sw - pad_left
    pool_mat = ((w_idx >= starts) & (w_idx < starts + kw)).astype(x.dtype)

    # Native layout: (B, C, H, W) -> (P, H, W) is a free view, no HBM transpose.
    x3 = x.reshape(p, h, w)

    # --- Per-chip, dtype- and layout-aware VMEM budgeting --------------------
    itemsize = x.dtype.itemsize
    sub = 8 * max(4 // itemsize, 1)          # sublane packing: 8 f32 / 16 bf16
    lane = 128

    def _pad_to(v, m):
        return ((v + m - 1) // m) * m

    in_plane = _pad_to(h, sub) * _pad_to(w, lane) * itemsize
    out_plane = _pad_to(out_h, sub) * _pad_to(out_w, lane) * itemsize
    scr_plane = _pad_to(hp, 8) * _pad_to(out_w, lane) * 4
    # 2x: double-buffered input/output blocks; scratch is single-buffered.
    bytes_per_plane = 2 * in_plane + 2 * out_plane + scr_plane

    try:
        vmem_cap = int(pltpu.get_tpu_info().vmem_capacity_bytes)
    except Exception:
        vmem_cap = 128 * 1024 * 1024
    # v5e/v6e (128 MiB): ~64 MiB budget / 96 MiB scoped limit.
    # v7x (64 MiB/core): ~38 MiB budget / 48 MiB scoped limit.
    budget = max(min(int(vmem_cap * 0.60), 64 * 1024 * 1024), 4 * 1024 * 1024)
    vmem_limit = max(min(int(vmem_cap * 0.75), 96 * 1024 * 1024),
                     8 * 1024 * 1024)

    tp_max = max(budget // bytes_per_plane, 1)
    # TODO(synk): add an H-tiling grid axis (with a (kh-sh)-row halo) for
    # images so large that even a single plane exceeds the VMEM budget, and a
    # planes-on-lanes variant for large-C / tiny-W inputs.
    if tp_max >= p:
        tp, num_blocks = p, 1
    else:
        num_blocks = -(-p // tp_max)
        tp = -(-p // num_blocks)
    pp = tp * num_blocks
    if pp != p:
        x3 = jnp.pad(x3, ((0, pp - p), (0, 0), (0, 0)))

    kernel = functools.partial(
        _avgpool_kernel, kh=kh, sh=sh,
        pad_top=pad_top, pad_bottom=pad_bottom,
        inv_area=1.0 / float(kh * kw))

    out3 = pl.pallas_call(
        kernel,
        out_shape=jax.ShapeDtypeStruct((pp, out_h, out_w), x.dtype),
        grid_spec=pltpu.PrefetchScalarGridSpec(
            num_scalar_prefetch=0,
            grid=(num_blocks,),
            in_specs=[
                pl.BlockSpec((tp, h, w), lambda i: (i, 0, 0)),
                pl.BlockSpec((w, out_w), lambda i: (0, 0)),
            ],
            out_specs=pl.BlockSpec((tp, out_h, out_w), lambda i: (i, 0, 0)),
            scratch_shapes=[pltpu.VMEM((tp, hp, out_w), jnp.float32)],
        ),
        compiler_params=pltpu.CompilerParams(
            dimension_semantics=("parallel",),
            vmem_limit_bytes=vmem_limit,
        ),
    )(x3, pool_mat)

    if pp != p:
        out3 = out3[:p]
    return out3.reshape(b, c, out_h, out_w)


def _reference(x, kernel_size, stride):
    # Pure-JAX reference: pad then average over windows (divide by kh*kw,
    # including padded zeros), matching F.pad + F.avg_pool2d.
    kh, kw = _pair(kernel_size)
    sh, sw = _pair(stride)
    b, c, h, w = x.shape
    out_h = (h + sh - 1) // sh
    out_w = (w + sw - 1) // sw
    pad_h = max((out_h - 1) * sh + kh - h, 0)
    pad_w = max((out_w - 1) * sw + kw - w, 0)
    pt, pb = pad_h // 2, pad_h - pad_h // 2
    plft, prt = pad_w // 2, pad_w - pad_w // 2
    xp = jnp.pad(x, ((0, 0), (0, 0), (pt, pb), (plft, prt)))
    summed = jax.lax.reduce_window(
        xp, 0.0, jax.lax.add, (1, 1, kh, kw), (1, 1, sh, sw), "VALID"
    )
    return summed / float(kh * kw)


if __name__ == "__main__":
    key = jax.random.PRNGKey(0)
    x = jax.random.normal(key, (2, 4, 16, 16), dtype=jnp.float32)

    kernel_size = 3
    stride = 2

    out = avg_pool2d_same_padding(x, kernel_size, stride)
    out = jax.block_until_ready(out)

    ref = _reference(x, kernel_size, stride)
    assert out.shape == ref.shape, (out.shape, ref.shape)
    assert jnp.allclose(out, ref, atol=1e-5, rtol=1e-5), "mismatch vs reference"

    print("KERNEL_OK")
</pallas_src>

<mosaic_0001>
module attributes {stable_mosaic.version = 11 : i64} {
  func.func @_avgpool_kernel(%arg0: i32, %arg1: memref<8x16x16xf32, #tpu.memory_space<vmem>>, %arg2: memref<16x8xf32, #tpu.memory_space<vmem>>, %arg3: memref<8x8x8xf32, #tpu.memory_space<vmem>>, %arg4: memref<8x17x8xf32, #tpu.memory_space<vmem>>) attributes {dimension_semantics = [#tpu.dimension_semantics<parallel>], iteration_bounds = array<i64: 1>, scalar_prefetch = 0 : i64, scratch_operands = 1 : i64, tpu.core_type = #tpu.core_type<tc>, window_params = [{transform_indices = @transform_0, window_bounds = array<i64: 8, 16, 16>}, {pipeline_mode = #tpu.pipeline_mode<synchronous>, transform_indices = @transform_1, window_bounds = array<i64: 16, 8>}, {transform_indices = @transform_2, window_bounds = array<i64: 8, 8, 8>}]} {
    %c0 = arith.constant 0 : index
    %c0_0 = arith.constant 0 : index
    %c0_1 = arith.constant 0 : index
    %0 = vector.load %arg1[%c0, %c0_0, %c0_1] : memref<8x16x16xf32, #tpu.memory_space<vmem>>, vector<8x16x16xf32>
    %1 = vector.shape_cast %0 : vector<8x16x16xf32> to vector<128x16xf32>
    %c0_2 = arith.constant 0 : index
    %c0_3 = arith.constant 0 : index
    %2 = vector.load %arg2[%c0_2, %c0_3] : memref<16x8xf32, #tpu.memory_space<vmem>>, vector<16x8xf32>
    %cst = arith.constant dense<0.000000e+00> : vector<128x8xf32>
    %3 = tpu.matmul %1, %2, %cst {dimension_numbers = #tpu.dot_dimension_numbers<[1], [0], [0], [1], [0, 0, 1, 1], [], []>} : vector<128x16xf32>, vector<16x8xf32>, vector<128x8xf32> -> vector<128x8xf32>
    %cst_4 = arith.constant 0.000000e+00 : f32
    %4 = vector.broadcast %cst_4 : f32 to vector<8x1x8xf32>
    %c0_5 = arith.constant 0 : index
    %c16 = arith.constant 16 : index
    %c0_6 = arith.constant 0 : index
    %5 = vector.load %arg4[%c0_5, %c16, %c0_6] : memref<8x17x8xf32, #tpu.memory_space<vmem>>, vector<8x1x8xf32>
    tpu.vector_store %arg4[%c0_5, %c16, %c0_6], %4 {strides = array<i32>} : memref<8x17x8xf32, #tpu.memory_space<vmem>>, vector<8x1x8xf32>,
    %6 = vector.shape_cast %3 : vector<128x8xf32> to vector<8x16x8xf32>
    %c0_7 = arith.constant 0 : index
    %c0_8 = arith.constant 0 : index
    %c0_9 = arith.constant 0 : index
    %7 = vector.load %arg4[%c0_7, %c0_8, %c0_9] : memref<8x17x8xf32, #tpu.memory_space<vmem>>, vector<8x16x8xf32>
    tpu.vector_store %arg4[%c0_7, %c0_8, %c0_9], %6 {strides = array<i32>} : memref<8x17x8xf32, #tpu.memory_space<vmem>>, vector<8x16x8xf32>,
    %c0_10 = arith.constant 0 : index
    %c0_11 = arith.constant 0 : index
    %c0_12 = arith.constant 0 : index
    %8 = tpu.strided_load %arg4[%c0_10, %c0_11, %c0_12] {strides = array<i32: 1, 2, 1>} : memref<8x17x8xf32, #tpu.memory_space<vmem>>, vector<8x8x8xf32>
    %c0_13 = arith.constant 0 : index
    %c1 = arith.constant 1 : index
    %c0_14 = arith.constant 0 : index
    %9 = tpu.strided_load %arg4[%c0_13, %c1, %c0_14] {strides = array<i32: 1, 2, 1>} : memref<8x17x8xf32, #tpu.memory_space<vmem>>, vector<8x8x8xf32>
    %10 = arith.addf %8, %9 : vector<8x8x8xf32>
    %c0_15 = arith.constant 0 : index
    %c2 = arith.constant 2 : index
    %c0_16 = arith.constant 0 : index
    %11 = tpu.strided_load %arg4[%c0_15, %c2, %c0_16] {strides = array<i32: 1, 2, 1>} : memref<8x17x8xf32, #tpu.memory_space<vmem>>, vector<8x8x8xf32>
    %12 = arith.addf %10, %11 : vector<8x8x8xf32>
    %cst_17 = arith.constant 0.111111112 : f32
    %13 = vector.broadcast %cst_17 : f32 to vector<8x8x8xf32>
    %14 = arith.mulf %12, %13 : vector<8x8x8xf32>
    %c0_18 = arith.constant 0 : index
    %c0_19 = arith.constant 0 : index
    %c0_20 = arith.constant 0 : index
    %15 = vector.load %arg3[%c0_18, %c0_19, %c0_20] : memref<8x8x8xf32, #tpu.memory_space<vmem>>, vector<8x8x8xf32>
    tpu.vector_store %arg3[%c0_18, %c0_19, %c0_20], %14 {strides = array<i32>} : memref<8x8x8xf32, #tpu.memory_space<vmem>>, vector<8x8x8xf32>,
    return
  }
  func.func @transform_0(%arg0: i32) -> (i32, i32, i32) {
    %c0_i32 = arith.constant 0 : i32
    %c0_i32_0 = arith.constant 0 : i32
    %c0_i32_1 = arith.constant 0 : i32
    return %arg0, %c0_i32, %c0_i32_0 : i32, i32, i32
  }
  func.func @transform_1(%arg0: i32) -> (i32, i32) {
    %c0_i32 = arith.constant 0 : i32
    %c0_i32_0 = arith.constant 0 : i32
    %c0_i32_1 = arith.constant 0 : i32
    return %c0_i32, %c0_i32_0 : i32, i32
  }
  func.func @transform_2(%arg0: i32) -> (i32, i32, i32) {
    %c0_i32 = arith.constant 0 : i32
    %c0_i32_0 = arith.constant 0 : i32
    %c0_i32_1 = arith.constant 0 : i32
    return %arg0, %c0_i32, %c0_i32_0 : i32, i32, i32
  }
}

</mosaic_0001>

<bundles_post_ra>
// kernel: tpu_custom_call.1
= control target key start
LH: loop header
LB: loop body
LE: loop exit
PB: predicated region body
PF: predicated region fallthrough
CT: control target
= control target key end

     0   :  { %7 = vsyncpa [#allocation4], 0  ;;  %s553_s0 = inlined_call_operand.hbm [shape: f32[8,16,16], index: 0, kind: input, shape index: {}]   ;;  %s554_s1 = inlined_call_operand.vmem [shape: f32[16,8], index: 1, kind: input, shape index: {}]   ;;  %s555_s2 = inlined_call_operand.hbm [shape: f32[8,8,8], index: 2, kind: output, shape index: {}]  }
   0x1   :  { %8 = vsyncpa [#allocation5], 0  ;;  %s475_s9 = smov [#allocation3]  }
   0x2   :  { %s14_s10 = sshll.u32 %s475_s9, 4  ;;  %s15_s10 = int_to_ptr.vmem [resolvable:$true] %s14_s10 }
   0x3   :  { %s439_s11 = scalar_lea.vmem %s15_s10, 2048  ;;  %p444_p1 = scmp.lt.s32.totalorder %s15_s10, %s15_s10 }
   0x4   :  { %p440_p0 = scmp.ne.s32.totalorder %s15_s10, %s439_s11  ;;  %p445_p2 = scmp.lt.s32.totalorder %s439_s11, %s439_s11 }
   0x6   :  { %p446_p3 = por %p445_p2, %p444_p1 }
   0x8   :  { %p447_p4 = pnand %p446_p3, %p440_p0 }
   0xa   :  { %450 = shalt.err (!%p447_p4)
}
   0xb   :  { %s476_s12 = smov 128   ;;  %s477_s13 = smov 8  }
   0xc   :  { %20 = dma.hbm_to_vmem [thread:$0]  %s553_s0, 2048, %s15_s10, [#allocation4], %s476_s12, %s476_s12, %s477_s13  }
   0xd   :  { %471 = dma.done.wait [#allocation4], 2048  }
   0xe   :  { %472 = vsyncadd [#allocation4], 4294965248  ;;  %v43_v0 = vld [vmem:[%s554_s1 + $0x8] sm:$0xff]  ;;  %v42_v1 = vld [vmem:[%s554_s1] sm:$0xff]  ;;  %vm44_vm0 = vcmask 130048   ;;  %vm238_vm1 = vcmask 57344  }
   0xf   :  { %394 = vmatprep.subr.mxu0 %v43_v0  ;;  %422 = vmatprep.subr.mxu1 %v43_v0  ;;  %v26_v2 = vld [vmem:[#allocation3] sm:$0xff]  ;;  %v27_v4 = vld [vmem:[#allocation3 + $0x8] sm:$0xff]  ;;  %v28_v6 = vld [vmem:[#allocation3 + $0x10] sm:$0xff]  ;;  %v478_v18 = vmov 0.0   ;;  %vm247_vm2 = vcmask 64512   ;;  %s479_s0 = smov [#allocation6]  }
  0x10   :  { %395 = vmatpush3.msra.mxu0 %v43_v0  ;;  %424 = vmatpush3.msra.mxu1 %v43_v0  ;;  %v34_v3 = vld [vmem:[#allocation3 + $0x40] sm:$0xff]  ;;  %v35_v5 = vld [vmem:[#allocation3 + $0x48] sm:$0xff]  ;;  %v36_v7 = vld [vmem:[#allocation3 + $0x50] sm:$0xff]  ;;  %239 = vst.msk [vmem:[#allocation2 + $0x10] sm:$0x1] %vm238_vm1, %v478_v18  ;;  %s348_s1 = sshll.u32 %s479_s0, 4  ;;  %s349_s1 = int_to_ptr.vmem [resolvable:$true] %s348_s1 }
  0x11   :  { %396 = vmatprep.subr.mxu0 %v42_v1  ;;  %423 = vmatprep.subr.mxu1 %v42_v1  ;;  %v29_v8 = vld [vmem:[#allocation3 + $0x18] sm:$0xff]  ;;  %v30_v10 = vld [vmem:[#allocation3 + $0x20] sm:$0xff]  ;;  %v31_v12 = vld [vmem:[#allocation3 + $0x28] sm:$0xff]  ;;  %240 = vst.msk [vmem:[#allocation2 + $0x28] sm:$0x1] %vm238_vm1, %v478_v18  ;;  %s451_s20 = scalar_lea.vmem %s349_s1, 1024  ;;  %p456_p6 = scmp.lt.s32.totalorder %s349_s1, %s349_s1 }
  0x12   :  { %397 = vmatpush3.msra.mxu0 %v42_v1  ;;  %425 = vmatpush3.msra.mxu1 %v42_v1  ;;  %v37_v9 = vld [vmem:[#allocation3 + $0x58] sm:$0xff]  ;;  %v38_v11 = vld [vmem:[#allocation3 + $0x60] sm:$0xff]  ;;  %v39_v13 = vld [vmem:[#allocation3 + $0x68] sm:$0xff]  ;;  %241 = vst.msk [vmem:[#allocation2 + $0x40] sm:$0x1] %vm238_vm1, %v478_v18  ;;  %p452_p5 = scmp.ne.s32.totalorder %s349_s1, %s451_s20  ;;  %p457_p7 = scmp.lt.s32.totalorder %s451_s20, %s451_s20 }
  0x13   :  { %398 = vmatprep.mubr.msk.f32.mxu0 %vm44_vm0, %v26_v2  ;;  %410 = vmatprep.mubr.msk.f32.mxu1 %vm44_vm0, %v34_v3  ;;  %v32_v14 = vld [vmem:[#allocation3 + $0x30] sm:$0xff]  ;;  %v33_v16 = vld [vmem:[#allocation3 + $0x38] sm:$0xff]  ;;  %242 = vst.msk [vmem:[#allocation2 + $0x58] sm:$0x1] %vm238_vm1, %v478_v18  ;;  %243 = vst.msk [vmem:[#allocation2 + $0x70] sm:$0x1] %vm238_vm1, %v478_v18 }
  0x14   :  { %399 = vmatmul.mubr.msk.f32.vlgmr.msra.gmra.mxu0 %vm44_vm0, %v27_v4  ;;  %411 = vmatmul.mubr.msk.f32.vlgmr.msra.gmra.mxu1 %vm44_vm0, %v35_v5  ;;  %v40_v15 = vld [vmem:[#allocation3 + $0x70] sm:$0xff]  ;;  %v41_v17 = vld [vmem:[#allocation3 + $0x78] sm:$0xff]  ;;  %244 = vst.msk [vmem:[#allocation2 + $0x88] sm:$0x1] %vm238_vm1, %v478_v18  ;;  %245 = vst.msk [vmem:[#allocation2 + $0xa0] sm:$0x1] %vm238_vm1, %v478_v18  ;;  %p458_p8 = por %p457_p7, %p456_p6 }
  0x15   :  { %401 = vmatprep.mubr.msk.f32.mxu0 %vm44_vm0, %v28_v6  ;;  %413 = vmatprep.mubr.msk.f32.mxu1 %vm44_vm0, %v36_v7  ;;  %246 = vst.msk [vmem:[#allocation2 + $0xb8] sm:$0x1] %vm238_vm1, %v478_v18 }
  0x16   :  { %p459_p9 = pnand %p458_p8, %p452_p5 }
  0x18   :  { %402 = vmatmul.mubr.msk.f32.gmra.mxu0 %vm44_vm0, %v29_v8  ;;  %414 = vmatmul.mubr.msk.f32.gmra.mxu1 %vm44_vm0, %v37_v9 }
  0x19   :  { %404 = vmatprep.mubr.msk.f32.mxu0 %vm44_vm0, %v30_v10  ;;  %416 = vmatprep.mubr.msk.f32.mxu1 %vm44_vm0, %v38_v11 }
  0x1c   :  { %405 = vmatmul.mubr.msk.f32.gmra.mxu0 %vm44_vm0, %v31_v12  ;;  %417 = vmatmul.mubr.msk.f32.gmra.mxu1 %vm44_vm0, %v39_v13 }
  0x1d   :  { %407 = vmatprep.mubr.msk.f32.mxu0 %vm44_vm0, %v32_v14  ;;  %419 = vmatprep.mubr.msk.f32.mxu1 %vm44_vm0, %v40_v15 }
  0x20   :  { %408 = vmatmul.mubr.msk.f32.gmra.mxu0 %vm44_vm0, %v33_v16  ;;  %420 = vmatmul.mubr.msk.f32.gmra.mxu1 %vm44_vm0, %v41_v17 }
  0xd4   :  { %v400_v19 = vpop.f32.mrf.mxu0  ;;  %v412_v20 = vpop.f32.mrf.mxu1 }
  0xd5   :  { %249 = vst.msk [vmem:[#allocation2 + $0x8] sm:$0xff] %vm247_vm2, %v400_v19  ;;  %257 = vst.msk [vmem:[#allocation2 + $0x68] sm:$0xff] %vm247_vm2, %v412_v20 }
  0xd6   :  { %v159_v21 = vpop.f32.mrf.mxu0  ;;  %v199_v22 = vpop.f32.mrf.mxu1 }
  0xd7   :  { %248 = vst.msk [vmem:[#allocation2] sm:$0xff] %vm247_vm2, %v159_v21  ;;  %256 = vst.msk [vmem:[#allocation2 + $0x60] sm:$0xff] %vm247_vm2, %v199_v22 }
  0xd8   :  { %v403_v23 = vpop.f32.mrf.mxu0  ;;  %v415_v24 = vpop.f32.mrf.mxu1 }
  0xd9   :  { %251 = vst.msk [vmem:[#allocation2 + $0x20] sm:$0xff] %vm247_vm2, %v403_v23  ;;  %259 = vst.msk [vmem:[#allocation2 + $0x80] sm:$0xff] %vm247_vm2, %v415_v24 }
  0xda   :  { %v169_v25 = vpop.f32.mrf.mxu0  ;;  %v209_v26 = vpop.f32.mrf.mxu1 }
  0xdb   :  { %250 = vst.msk [vmem:[#allocation2 + $0x18] sm:$0xff] %vm247_vm2, %v169_v25  ;;  %258 = vst.msk [vmem:[#allocation2 + $0x78] sm:$0xff] %vm247_vm2, %v209_v26 }
  0xdc   :  { %v406_v27 = vpop.f32.mrf.mxu0  ;;  %v418_v28 = vpop.f32.mrf.mxu1 }
  0xdd   :  { %253 = vst.msk [vmem:[#allocation2 + $0x38] sm:$0xff] %vm247_vm2, %v406_v27  ;;  %261 = vst.msk [vmem:[#allocation2 + $0x98] sm:$0xff] %vm247_vm2, %v418_v28 }
  0xde   :  { %v179_v29 = vpop.f32.mrf.mxu0  ;;  %v219_v30 = vpop.f32.mrf.mxu1  ;;  %v264_v31 = vld [vmem:[#allocation2] ss:$2 sm:$0xff]  ;;  %v280_v33 = vld [vmem:[#allocation2 + $0x1] ss:$2 sm:$0xff] }
  0xdf   :  { %v272_v32 = vld [vmem:[#allocation2 + $0x60] ss:$2 sm:$0xff]  ;;  %252 = vst.msk [vmem:[#allocation2 + $0x30] sm:$0xff] %vm247_vm2, %v179_v29  ;;  %260 = vst.msk [vmem:[#allocation2 + $0x90] sm:$0xff] %vm247_vm2, %v219_v30  ;;  %v288_v34 = vld [vmem:[#allocation2 + $0x61] ss:$2 sm:$0xff]  ;;  %v295_v35 = vadd.f32 %v280_v33, %v264_v31 }
  0xe0   :  { %v409_v36 = vpop.f32.mrf.mxu0  ;;  %v421_v37 = vpop.f32.mrf.mxu1  ;;  %v299_v38 = vadd.f32 %v288_v34, %v272_v32  ;;  %v304_v39 = vld [vmem:[#allocation2 + $0x2] ss:$2 sm:$0xff] }
  0xe1   :  { %255 = vst.msk [vmem:[#allocation2 + $0x50] sm:$0xff] %vm247_vm2, %v409_v36  ;;  %263 = vst.msk [vmem:[#allocation2 + $0xb0] sm:$0xff] %vm247_vm2, %v421_v37  ;;  %v312_v40 = vld [vmem:[#allocation2 + $0x62] ss:$2 sm:$0xff]  ;;  %v319_v41 = vadd.f32 %v304_v39, %v295_v35 }
  0xe2   :  { %v189_v42 = vpop.f32.mrf.mxu0  ;;  %v229_v43 = vpop.f32.mrf.mxu1  ;;  %v266_v44 = vld [vmem:[#allocation2 + $0x18] ss:$2 sm:$0xff]  ;;  %v282_v46 = vld [vmem:[#allocation2 + $0x19] ss:$2 sm:$0xff]  ;;  %v323_v47 = vadd.f32 %v312_v40, %v299_v38 }
  0xe3   :  { %v274_v45 = vld [vmem:[#allocation2 + $0x78] ss:$2 sm:$0xff]  ;;  %254 = vst.msk [vmem:[#allocation2 + $0x48] sm:$0xff] %vm247_vm2, %v189_v42  ;;  %262 = vst.msk [vmem:[#allocation2 + $0xa8] sm:$0xff] %vm247_vm2, %v229_v43  ;;  %v290_v48 = vld [vmem:[#allocation2 + $0x79] ss:$2 sm:$0xff]  ;;  %v296_v49 = vadd.f32 %v282_v46, %v266_v44 }
  0xe4   :  { %v300_v50 = vadd.f32 %v290_v48, %v274_v45  ;;  %v306_v51 = vld [vmem:[#allocation2 + $0x1a] ss:$2 sm:$0xff]  ;;  %v327_v52 = vmul.f32 0.11111111, %v319_v41  ;;  %v331_v53 = vmul.f32 0.11111111, %v323_v47 }
  0xe5   :  { %v314_v54 = vld [vmem:[#allocation2 + $0x7a] ss:$2 sm:$0xff]  ;;  %v320_v55 = vadd.f32 %v306_v51, %v296_v49 }
  0xe6   :  { %v268_v56 = vld [vmem:[#allocation2 + $0x30] ss:$2 sm:$0xff]  ;;  %v284_v58 = vld [vmem:[#allocation2 + $0x31] ss:$2 sm:$0xff]  ;;  %v324_v59 = vadd.f32 %v314_v54, %v300_v50  ;;  %335 = vst.msk [vmem:[#allocation6] sm:$0xff] %vm247_vm2, %v327_v52  ;;  %339 = vst.msk [vmem:[#allocation6 + $0x20] sm:$0xff] %vm247_vm2, %v331_v53 }
  0xe7   :  { %v276_v57 = vld [vmem:[#allocation2 + $0x90] ss:$2 sm:$0xff]  ;;  %v292_v60 = vld [vmem:[#allocation2 + $0x91] ss:$2 sm:$0xff]  ;;  %v297_v61 = vadd.f32 %v284_v58, %v268_v56  ;;  %v328_v0 = vmul.f32 0.11111111, %v320_v55 }
  0xe8   :  { %v301_v62 = vadd.f32 %v292_v60, %v276_v57  ;;  %v308_v63 = vld [vmem:[#allocation2 + $0x32] ss:$2 sm:$0xff]  ;;  %v332_v1 = vmul.f32 0.11111111, %v324_v59 }
  0xe9   :  { %v316_v2 = vld [vmem:[#allocation2 + $0x92] ss:$2 sm:$0xff]  ;;  %v321_v3 = vadd.f32 %v308_v63, %v297_v61  ;;  %336 = vst.msk [vmem:[#allocation6 + $0x8] sm:$0xff] %vm247_vm2, %v328_v0 }
  0xea   :  { %v270_v4 = vld [vmem:[#allocation2 + $0x48] ss:$2 sm:$0xff]  ;;  %v286_v6 = vld [vmem:[#allocation2 + $0x49] ss:$2 sm:$0xff]  ;;  %v325_v7 = vadd.f32 %v316_v2, %v301_v62  ;;  %340 = vst.msk [vmem:[#allocation6 + $0x28] sm:$0xff] %vm247_vm2, %v332_v1 }
  0xeb   :  { %v278_v5 = vld [vmem:[#allocation2 + $0xa8] ss:$2 sm:$0xff]  ;;  %v294_v8 = vld [vmem:[#allocation2 + $0xa9] ss:$2 sm:$0xff]  ;;  %v298_v9 = vadd.f32 %v286_v6, %v270_v4  ;;  %v329_v12 = vmul.f32 0.11111111, %v321_v3 }
  0xec   :  { %v302_v10 = vadd.f32 %v294_v8, %v278_v5  ;;  %v310_v11 = vld [vmem:[#allocation2 + $0x4a] ss:$2 sm:$0xff]  ;;  %v333_v13 = vmul.f32 0.11111111, %v325_v7 }
  0xed   :  { %v318_v14 = vld [vmem:[#allocation2 + $0xaa] ss:$2 sm:$0xff]  ;;  %v322_v15 = vadd.f32 %v310_v11, %v298_v9  ;;  %337 = vst.msk [vmem:[#allocation6 + $0x10] sm:$0xff] %vm247_vm2, %v329_v12 }
  0xee   :  { %v326_v16 = vadd.f32 %v318_v14, %v302_v10  ;;  %341 = vst.msk [vmem:[#allocation6 + $0x30] sm:$0xff] %vm247_vm2, %v333_v13 }
  0xef   :  { %v330_v17 = vmul.f32 0.11111111, %v322_v15 }
  0xf0   :  { %v334_v18 = vmul.f32 0.11111111, %v326_v16 }
  0xf1   :  { %338 = vst.msk [vmem:[#allocation6 + $0x18] sm:$0xff] %vm247_vm2, %v330_v17 }
  0xf2   :  { %342 = vst.msk [vmem:[#allocation6 + $0x38] sm:$0xff] %vm247_vm2, %v334_v18 }
  0xf3   :  { %462 = shalt.err (!%p459_p9)
}
  0xf4   :  { %354 = dma.vmem_to_hbm [thread:$0]  %s349_s1, 1024, %s555_s2, [#allocation5], %s476_s12, %s476_s12, %s477_s13  }
  0xf5   :  { %473 = dma.done.wait [#allocation5], 1024  }
  0xf6   :  { %474 = vsyncadd [#allocation5], 4294966272 }
  0xf7   :  { %358 = vsyncpa [#allocation4], 1 }
  0xf8   :  { %359 = vsyncpa [#allocation5], 1 }

</bundles_post_ra>
